<compile_context>
chip_gen: v5e
topology: v5e:2x2
jax: 0.10.0
libtpu: 0.0.40
codegen_flags: <defaults>
</compile_context>

<pallas_src>
import functools
import math

import jax
import jax.numpy as jnp
import numpy as np
from jax import lax
from jax.experimental import pallas as pl
from jax.experimental.pallas import tpu as pltpu


def _round_up(x, m):
    return ((x + m - 1) // m) * m


def _mlp_kernel(num_hidden_layers, chunk, *refs):
    """Chained Linear(+ReLU) layers on one batch tile (batch on the lane axis).

    refs = (x_ref, w_0, ..., w_{d-1}, pack_ref, o_ref)

    x_ref    : [tile, F]          input rows (batch-major, no wrapper transpose)
    w_k      : [out_k, in_k]      PyTorch Linear layout, full block in VMEM
    pack_ref : [width, d + 2]     cols 0..d-1 = hidden biases, col d = final
                                  weight column, col d+1 row 0 = final bias
    o_ref    : [1, tile]          lane-dense output row
    """
    x_ref = refs[0]
    o_ref = refs[-1]
    pack_ref = refs[-2]
    w_refs = refs[1:1 + num_hidden_layers]
    d = num_hidden_layers

    tile = x_ref.shape[0]
    n_chunks = tile // chunk

    # Tiny parameters: load once per grid step, reuse across chunks.
    ws = [w_refs[k][...].astype(jnp.float32) for k in range(d)]
    pack = pack_ref[...].astype(jnp.float32)          # [width, d + 2]
    w_last = pack[:, d:d + 1]                         # [width, 1]
    b_last = pack[0:1, d + 1:d + 2]                   # [1, 1] -> lane-broadcasts

    # Static chunking over the lane (batch) axis: each chunk's activations are
    # [width, chunk] <= [32, 512] f32 = 16 vregs, so big tiles don't spill.
    for c in range(n_chunks):
        off = c * chunk                               # static, 128-aligned
        xb = x_ref[off:off + chunk, :].astype(jnp.float32)      # [chunk, F]

        if d > 0:
            # First layer contracts over the feature axis directly:
            # [width, F] . [chunk, F]^T -> [width, chunk]; batch lands on lanes.
            h = lax.dot_general(ws[0], xb, (((1,), (1,)), ((), ())),
                                preferred_element_type=jnp.float32)
            h = jnp.maximum(h + pack[:, 0:1], 0.0)    # bias + ReLU (Dropout(0)==Id)
            for k in range(1, d):
                h = jnp.dot(ws[k], h, preferred_element_type=jnp.float32)
                h = jnp.maximum(h + pack[:, k:k + 1], 0.0)
            # Final Linear(width, 1): VPU multiply + sublane (XLU) reduce instead
            # of a lane-wasteful N=1 MXU matmul.
            out = jnp.sum(h * w_last, axis=0, keepdims=True) + b_last   # [1, chunk]
        else:
            # depth == 0: single Linear(input_size, 1) directly on the input.
            out = lax.dot_general(w_last, xb, (((0,), (1,)), ((), ())),
                                  preferred_element_type=jnp.float32) + b_last

        o_ref[:, off:off + chunk] = out.astype(o_ref.dtype)


def mlp_forward(x, weights, biases, *, tile_b=2048):
    """Pallas MLP forward.

    x:       [B, input_size] float32
    weights: PyTorch-layout Linear weights; weights[k] is [out_k, in_k]
             (depth hidden layers of `width`, plus a final [1, width] layer)
    biases:  biases[k] is [out_k]
    returns: [B, 1] float32
    """
    B, F = x.shape
    d = len(weights) - 1
    width = weights[-1].shape[1]      # in_features of the final Linear

    # Lane/MXU-aligned batch tile: always a multiple of 128, capped so the grid
    # has >= 2 steps whenever the batch allows it (both v7x TensorCores busy).
    B_lane = _round_up(B, 128)
    tile = min(_round_up(max(tile_b, 128), 128), _round_up(B_lane // 2, 128))
    tile = max(tile, 128)
    B_pad = _round_up(B, tile)
    grid = (B_pad // tile,)

    x = x.astype(jnp.float32)
    if B_pad != B:                    # only when B is not already a tile multiple
        x = jnp.pad(x, ((0, B_pad - B), (0, 0)))

    # Per-layer hidden weights stay as their own (tiny, fully VMEM-resident)
    # blocks; every remaining small parameter is packed into ONE VMEM block.
    in_specs = [pl.BlockSpec((tile, F), lambda i: (i, 0))]
    flat_params = []
    for k in range(d):
        w = jnp.asarray(weights[k], jnp.float32)                 # [out, in]
        in_specs.append(pl.BlockSpec(w.shape, lambda i: (0, 0)))
        flat_params.append(w)

    cols = [jnp.asarray(biases[k], jnp.float32).reshape(width, 1) for k in range(d)]
    cols.append(jnp.asarray(weights[-1], jnp.float32).reshape(width, 1))
    b_last_scalar = jnp.asarray(biases[-1], jnp.float32).reshape(-1)[0]
    cols.append(jnp.zeros((width, 1), jnp.float32).at[0, 0].set(b_last_scalar))
    pack = jnp.concatenate(cols, axis=1)                          # [width, d + 2]
    in_specs.append(pl.BlockSpec(pack.shape, lambda i: (0, 0)))
    flat_params.append(pack)

    out_specs = pl.BlockSpec((1, tile), lambda i: (0, i))         # lane-dense row

    chunk = math.gcd(tile, 512)       # divides tile, multiple of 128
    kernel = functools.partial(_mlp_kernel, d, chunk)

    out_row = pl.pallas_call(
        kernel,
        out_shape=jax.ShapeDtypeStruct((1, B_pad), jnp.float32),
        grid=grid,
        in_specs=in_specs,
        out_specs=out_specs,
        compiler_params=pltpu.CompilerParams(
            dimension_semantics=("parallel",),        # batch tiles across TCs (v7x)
            vmem_limit_bytes=32 * 1024 * 1024,        # plenty of headroom everywhere
        ),
    )(x, *flat_params)

    return out_row[0, :B].reshape(B, 1)


def mlp_reference(x, weights, biases):
    h = x.astype(jnp.float32)
    for k in range(len(weights) - 1):
        h = jnp.maximum(h @ weights[k].T + biases[k], 0.0)
    return h @ weights[-1].T + biases[-1]


if __name__ == "__main__":
    # options = {'activation': 'relu', 'dropout_proportion': 0, 'width': 32, 'depth': 2}
    input_size = 16
    width = 32
    depth = 2

    key = jax.random.PRNGKey(0)
    keys = jax.random.split(key, 2 * (depth + 1) + 3)

    # PyTorch-layout params: W_k [out, in], b_k [out]; same init scale as nn.Linear.
    layer_dims = [input_size] + [width] * depth + [1]
    weights, biases = [], []
    for k in range(depth + 1):
        fan_in, fan_out = layer_dims[k], layer_dims[k + 1]
        bound = 1.0 / np.sqrt(fan_in)
        w = jax.random.uniform(keys[2 * k], (fan_out, fan_in), jnp.float32, -bound, bound)
        b = jax.random.uniform(keys[2 * k + 1], (fan_out,), jnp.float32, -bound, bound)
        weights.append(w)
        biases.append(b)

    # batch=512  -> two 256-row tiles (v7x megacore path, no pad);
    # batch=50   -> single 128 tile, exercises the pad-to-tile path;
    # batch=4096 -> two 2048 tiles, exercises the in-kernel 512-lane chunk loop.
    for batch, xkey in ((512, keys[-1]), (50, keys[-2]), (4096, keys[-3])):
        x = jax.random.normal(xkey, (batch, input_size), jnp.float32)
        out = jax.block_until_ready(mlp_forward(x, weights, biases))
        ref = mlp_reference(x, weights, biases)
        assert out.shape == (batch, 1)
        np.testing.assert_allclose(np.asarray(out), np.asarray(ref), rtol=1e-5, atol=2e-5)

    print("KERNEL_OK")
</pallas_src>

<mosaic_0001>
module attributes {stable_mosaic.version = 11 : i64} {
  func.func @_mlp_kernel(%arg0: i32, %arg1: memref<256x16xf32, #tpu.memory_space<vmem>>, %arg2: memref<32x16xf32, #tpu.memory_space<vmem>>, %arg3: memref<32x32xf32, #tpu.memory_space<vmem>>, %arg4: memref<32x4xf32, #tpu.memory_space<vmem>>, %arg5: memref<1x256xf32, #tpu.memory_space<vmem>>) attributes {dimension_semantics = [#tpu.dimension_semantics<parallel>], iteration_bounds = array<i64: 2>, scalar_prefetch = 0 : i64, scratch_operands = 0 : i64, tpu.core_type = #tpu.core_type<tc>, window_params = [{transform_indices = @transform_0, window_bounds = array<i64: 256, 16>}, {pipeline_mode = #tpu.pipeline_mode<synchronous>, transform_indices = @transform_1, window_bounds = array<i64: 32, 16>}, {pipeline_mode = #tpu.pipeline_mode<synchronous>, transform_indices = @transform_2, window_bounds = array<i64: 32, 32>}, {pipeline_mode = #tpu.pipeline_mode<synchronous>, transform_indices = @transform_3, window_bounds = array<i64: 32, 4>}, {transform_indices = @transform_4, window_bounds = array<i64: 1, 256>}]} {
    %c0 = arith.constant 0 : index
    %c0_0 = arith.constant 0 : index
    %0 = vector.load %arg2[%c0, %c0_0] : memref<32x16xf32, #tpu.memory_space<vmem>>, vector<32x16xf32>
    %c0_1 = arith.constant 0 : index
    %c0_2 = arith.constant 0 : index
    %1 = vector.load %arg3[%c0_1, %c0_2] : memref<32x32xf32, #tpu.memory_space<vmem>>, vector<32x32xf32>
    %c0_3 = arith.constant 0 : index
    %c0_4 = arith.constant 0 : index
    %2 = vector.load %arg4[%c0_3, %c0_4] : memref<32x4xf32, #tpu.memory_space<vmem>>, vector<32x4xf32>
    %3 = vector.extract_strided_slice %2 {offsets = [0, 2], sizes = [32, 1], strides = [1, 1]} : vector<32x4xf32> to vector<32x1xf32>
    %4 = vector.extract_strided_slice %2 {offsets = [0, 3], sizes = [1, 1], strides = [1, 1]} : vector<32x4xf32> to vector<1x1xf32>
    %c0_5 = arith.constant 0 : index
    %c0_6 = arith.constant 0 : index
    %5 = vector.load %arg1[%c0_5, %c0_6] : memref<256x16xf32, #tpu.memory_space<vmem>>, vector<256x16xf32>
    %cst = arith.constant dense<0.000000e+00> : vector<32x256xf32>
    %6 = tpu.matmul %0, %5, %cst {dimension_numbers = #tpu.dot_dimension_numbers<[1], [1], [0], [0], [0, 0, 1, 0], [], []>} : vector<32x16xf32>, vector<256x16xf32>, vector<32x256xf32> -> vector<32x256xf32>
    %7 = vector.extract_strided_slice %2 {offsets = [0, 0], sizes = [32, 1], strides = [1, 1]} : vector<32x4xf32> to vector<32x1xf32>
    %8 = vector.broadcast %7 : vector<32x1xf32> to vector<32x256xf32>
    %9 = arith.addf %6, %8 : vector<32x256xf32>
    %cst_7 = arith.constant 0.000000e+00 : f32
    %10 = vector.broadcast %cst_7 : f32 to vector<32x256xf32>
    %11 = arith.maximumf %9, %10 : vector<32x256xf32>
    %cst_8 = arith.constant dense<0.000000e+00> : vector<32x256xf32>
    %12 = tpu.matmul %1, %11, %cst_8 {dimension_numbers = #tpu.dot_dimension_numbers<[1], [0], [0], [1], [0, 0, 1, 1], [], []>} : vector<32x32xf32>, vector<32x256xf32>, vector<32x256xf32> -> vector<32x256xf32>
    %13 = vector.extract_strided_slice %2 {offsets = [0, 1], sizes = [32, 1], strides = [1, 1]} : vector<32x4xf32> to vector<32x1xf32>
    %14 = vector.broadcast %13 : vector<32x1xf32> to vector<32x256xf32>
    %15 = arith.addf %12, %14 : vector<32x256xf32>
    %cst_9 = arith.constant 0.000000e+00 : f32
    %16 = vector.broadcast %cst_9 : f32 to vector<32x256xf32>
    %17 = arith.maximumf %15, %16 : vector<32x256xf32>
    %18 = vector.broadcast %3 : vector<32x1xf32> to vector<32x256xf32>
    %19 = arith.mulf %17, %18 : vector<32x256xf32>
    %cst_10 = arith.constant dense<0.000000e+00> : vector<256xf32>
    %20 = vector.multi_reduction <add>, %19, %cst_10 [0] : vector<32x256xf32> to vector<256xf32>
    %21 = vector.shape_cast %20 : vector<256xf32> to vector<1x256xf32>
    %22 = vector.broadcast %4 : vector<1x1xf32> to vector<1x256xf32>
    %23 = arith.addf %21, %22 : vector<1x256xf32>
    %c0_11 = arith.constant 0 : index
    %c0_12 = arith.constant 0 : index
    %24 = vector.load %arg5[%c0_11, %c0_12] : memref<1x256xf32, #tpu.memory_space<vmem>>, vector<1x256xf32>
    tpu.vector_store %arg5[%c0_11, %c0_12], %23 {strides = array<i32>} : memref<1x256xf32, #tpu.memory_space<vmem>>, vector<1x256xf32>,
    return
  }
  func.func @transform_0(%arg0: i32) -> (i32, i32) {
    %c0_i32 = arith.constant 0 : i32
    %c0_i32_0 = arith.constant 0 : i32
    return %arg0, %c0_i32 : i32, i32
  }
  func.func @transform_1(%arg0: i32) -> (i32, i32) {
    %c0_i32 = arith.constant 0 : i32
    %c0_i32_0 = arith.constant 0 : i32
    %c0_i32_1 = arith.constant 0 : i32
    return %c0_i32, %c0_i32_0 : i32, i32
  }
  func.func @transform_2(%arg0: i32) -> (i32, i32) {
    %c0_i32 = arith.constant 0 : i32
    %c0_i32_0 = arith.constant 0 : i32
    %c0_i32_1 = arith.constant 0 : i32
    return %c0_i32, %c0_i32_0 : i32, i32
  }
  func.func @transform_3(%arg0: i32) -> (i32, i32) {
    %c0_i32 = arith.constant 0 : i32
    %c0_i32_0 = arith.constant 0 : i32
    %c0_i32_1 = arith.constant 0 : i32
    return %c0_i32, %c0_i32_0 : i32, i32
  }
  func.func @transform_4(%arg0: i32) -> (i32, i32) {
    %c0_i32 = arith.constant 0 : i32
    %c0_i32_0 = arith.constant 0 : i32
    return %c0_i32, %arg0 : i32, i32
  }
}

</mosaic_0001>

<bundles_post_ra>
// kernel: tpu_custom_call.1
= control target key start
LH: loop header
LB: loop body
LE: loop exit
PB: predicated region body
PF: predicated region fallthrough
CT: control target
= control target key end

     0   :  { %9 = vsyncpa [#allocation3], 0  ;;  %s1095_s0 = inlined_call_operand.vmem [shape: f32[512,16], index: 0, kind: input, shape index: {}]   ;;  %s1096_s1 = inlined_call_operand.vmem [shape: f32[32,16], index: 1, kind: input, shape index: {}]   ;;  %s1097_s2 = inlined_call_operand.vmem [shape: f32[32,32], index: 2, kind: input, shape index: {}]   ;;  %s1098_s3 = inlined_call_operand.vmem [shape: f32[32,4], index: 3, kind: input, shape index: {}]   ;;  %s1099_s4 = inlined_call_operand.hbm [shape: f32[1,512], index: 4, kind: output, shape index: {}]  }
   0x1   :  { %11 = vsyncpa [#allocation3 + $0x1], 0  ;;  %s872_s15 = smov 0   ;;  %s874_s16 = smov 0  }
   0x2   :  { %s876_s17 = smov 0   ;;  %s878_s18 = smov 0  }
   0x3 LB: > { %s893_s19 = sadd.s32 4294967295, %s841_s18   ;;  %s667_s20 = sadd.s32 4294967294, %s841_s18   ;;  %s841_s18 = sphi %s878_s18, %s1105_s18   ;;  %s837_s17 = sphi %s876_s17, %s1104_s17   ;;  %s833_s16 = sphi %s874_s16, %s1103_s16   ;;  %s829_s15 = sphi %s872_s15, %s1102_s15  }
   0x4   : > { %s897_s21 = sadd.s32 1, %s841_s18   ;;  %s113_s22 = sadd.s32 1, %s837_s17 }
   0x5   : > { %s110_s23 = ssub.s32 %s841_s18, %s897_s21  ;;  %p123_p0 = scmp.ne.s32.totalorder %s837_s17, %s833_s16 }
   0x6   : > { %p111_p1 = scmp.eq.s32.totalorder %s110_s23, 0  ;;  %p124_p2 = scmp.eq.s32.totalorder %s893_s19, 1 }
   0x7   : > { %p129_p3 = scmp.ne.s32.totalorder %s833_s16, %s829_s15  ;;  %p130_p4 = scmp.eq.s32.totalorder %s667_s20, 1 }
   0x8   : > { %s908_s24 = scalar_select %p111_p1, %s837_s17, %s113_s22  }
   0x9   : > { %p910_p5 = por %p124_p2, %p123_p0  ;;  %p914_p6 = por %p130_p4, %p129_p3 }
   0xa   : > { %p670_p7 = scmp.ge.s32.totalorder %s841_s18, 1  ;;  %p166_p8 = scmp.lt.s32.totalorder %s841_s18, 3 }
   0xc   : > { %p167_p9 = pnand %p670_p7, %p166_p8 }
   0xd   : > { %s672_s27 = sshll.u32 (!%p167_p9), %s893_s19, 5  ;;  %s189_s13 = sand.u32 (!%p167_p9), 1, %s833_s16  }
   0xe   : > { %170 = sbr.rel (%p167_p9) target bundleno = 432 (0x1b0), region = 36  ;;  %p193_p10 = scmp.lt.s32.totalorder (!%p167_p9), %s672_s27, 63 }
   0xf   : > { %s671_s14 = sshll.u32 (!%p167_p9), %s189_s13, 1  ;;  %s723_s20 = sshll.u32 (!%p167_p9), %s893_s19, 1 }
  0x10   : > { %s593_s19 = scalar_lea.sflag (!%p167_p9), [#allocation3], %s189_s13  ;;  %s799_s9 = scalar_lea.hbm (!%p167_p9), %s1099_s4, 4 }
  0x13   : > { %s1107_s27 = smov (!%p193_p10, %s672_s27), 63  ;;  %vm263_vm0 = vcmask 130048   ;;  %v963_v18 = vld [vmem:[%s1098_s3 + $0x8] sm:$0xff]  ;;  %v843_v21 = vmov 0   ;;  %v977_v24 = vld [vmem:[%s1098_s3] sm:$0xff]  ;;  %v991_v29 = vld [vmem:[%s1098_s3 + $0x18] sm:$0xff] }
  0x14   : > { %s673_s28 = sshll.u32 %s1107_s27, 3  ;;  %770 = vset.pattern.permute.xlu1 %v843_v21  ;;  %769 = vset.pattern.permute.xlu0 %v843_v21  ;;  %v1005_v34 = vld [vmem:[%s1098_s3 + $0x10] sm:$0xff]  ;;  %v199_v37 = vld [vmem:[%s1096_s1] sm:$0xff]  ;;  %v200_v38 = vld [vmem:[%s1096_s1 + $0x8] sm:$0xff]  ;;  %v844_v49 = vmov 1   ;;  %vm454_vm1 = vcmask 261120   ;;  %s603_s27 = scalar_lea.hbm %s1099_s4, %s723_s20 }
  0x15   : > { %s924_s5 = scalar_lea.vmem %s1095_s0, %s673_s28  ;;  %250 = vperm.xlu1 %770, %v963_v18   ;;  %260 = vperm.xlu0 %769, %v991_v29   ;;  %v201_v39 = vld [vmem:[%s1096_s1 + $0x10] sm:$0xff]  ;;  %v202_v40 = vld [vmem:[%s1096_s1 + $0x18] sm:$0xff]  ;;  %s191_s28 = scalar_lea.vmem [#allocation2], %s671_s14  ;;  %vm584_vm2 = vcmask 1040384  }
  0x16   : > { %v226_v0 = vld [vmem:[%s924_s5 + $0x78] sm:$0xff]  ;;  %v225_v2 = vld [vmem:[%s924_s5 + $0x70] sm:$0xff]  ;;  %v224_v4 = vld [vmem:[%s924_s5 + $0x68] sm:$0xff]  ;;  %771 = vset.pattern.permute.xlu2 %v844_v49  ;;  %s605_s29 = sshll.u32 %s191_s28, 4  ;;  %s607_s30 = sshll.u32 %s603_s27, 4  ;;  %s606_s29 = int_to_ptr.vmem [resolvable:$true] %s605_s29  ;;  %s608_s30 = int_to_ptr.hbm [resolvable:$true] %s607_s30 }
  0x17   : > { %v242_v1 = vld [vmem:[%s924_s5 + $0xf8] sm:$0xff]  ;;  %674 = vmatpush.xpose.msk.msra.mxu0 %vm263_vm0, %v226_v0  ;;  %v241_v3 = vld [vmem:[%s924_s5 + $0xf0] sm:$0xff]  ;;  %v240_v5 = vld [vmem:[%s924_s5 + $0xe8] sm:$0xff]  ;;  %439 = vperm.xlu2 %771, %v977_v24  }
  0x18   : > { %694 = vmatpush.xpose.msk.msra.mxu1 %vm263_vm0, %v242_v1  ;;  %v223_v6 = vld [vmem:[%s924_s5 + $0x60] sm:$0xff]  ;;  %v222_v8 = vld [vmem:[%s924_s5 + $0x58] sm:$0xff]  ;;  %v221_v10 = vld [vmem:[%s924_s5 + $0x50] sm:$0xff] }
  0x19   : > { %v239_v7 = vld [vmem:[%s924_s5 + $0xe0] sm:$0xff]  ;;  %v238_v9 = vld [vmem:[%s924_s5 + $0xd8] sm:$0xff]  ;;  %v237_v11 = vld [vmem:[%s924_s5 + $0xd0] sm:$0xff] }
  0x1a   : > { %v220_v12 = vld [vmem:[%s924_s5 + $0x48] sm:$0xff]  ;;  %v219_v14 = vld [vmem:[%s924_s5 + $0x40] sm:$0xff]  ;;  %v218_v16 = vld [vmem:[%s924_s5 + $0x38] sm:$0xff] }
  0x1b   : > { %675 = vmatpush.xpose.msk.msra.mxu0 %vm263_vm0, %v225_v2  ;;  %v236_v13 = vld [vmem:[%s924_s5 + $0xc8] sm:$0xff]  ;;  %v235_v15 = vld [vmem:[%s924_s5 + $0xc0] sm:$0xff]  ;;  %v234_v17 = vld [vmem:[%s924_s5 + $0xb8] sm:$0xff]  ;;  %v845_v2 = vmov 2  }
  0x1c   : > { %695 = vmatpush.xpose.msk.msra.mxu1 %vm263_vm0, %v241_v3  ;;  %v217_v19 = vld [vmem:[%s924_s5 + $0x30] sm:$0xff]  ;;  %v216_v22 = vld [vmem:[%s924_s5 + $0x28] sm:$0xff]  ;;  %v215_v25 = vld [vmem:[%s924_s5 + $0x20] sm:$0xff] }
  0x1d   : > { %v233_v20 = vld [vmem:[%s924_s5 + $0xb0] sm:$0xff]  ;;  %v232_v23 = vld [vmem:[%s924_s5 + $0xa8] sm:$0xff]  ;;  %v231_v26 = vld [vmem:[%s924_s5 + $0xa0] sm:$0xff]  ;;  %245 = vperm.xlu1 %770, %v977_v24   ;;  %255 = vperm.xlu0 %769, %v1005_v34  }
  0x1e   : > { %v214_v27 = vld [vmem:[%s924_s5 + $0x18] sm:$0xff]  ;;  %v213_v30 = vld [vmem:[%s924_s5 + $0x10] sm:$0xff]  ;;  %v212_v32 = vld [vmem:[%s924_s5 + $0x8] sm:$0xff] }
  0x1f   : > { %676 = vmatpush.xpose.msk.msra.mxu0 %vm263_vm0, %v224_v4  ;;  %v230_v28 = vld [vmem:[%s924_s5 + $0x98] sm:$0xff]  ;;  %v229_v31 = vld [vmem:[%s924_s5 + $0x90] sm:$0xff]  ;;  %v228_v33 = vld [vmem:[%s924_s5 + $0x88] sm:$0xff]  ;;  %443 = vperm.xlu2 %771, %v963_v18  }
  0x20   : > { %696 = vmatpush.xpose.msk.msra.mxu1 %vm263_vm0, %v240_v5  ;;  %v211_v35 = vld [vmem:[%s924_s5] sm:$0xff] }
  0x21   : > { %v227_v36 = vld [vmem:[%s924_s5 + $0x80] sm:$0xff]  ;;  %s793_s5 = sshra.s32 %s608_s30, 4  ;;  %s794_s5 = int_to_ptr.hbm [resolvable:$true] %s793_s5 }
  0x22   : > { %s795_s6 = scalar_lea.hbm %s794_s5, 2  ;;  %p800_p0 = scmp.lt.s32.totalorder %s794_s5, %s1099_s4 }
  0x23   : > { %677 = vmatpush.xpose.msk.msra.mxu0 %vm263_vm0, %v223_v6  ;;  %p796_p11 = scmp.ne.s32.totalorder %s794_s5, %s795_s6  ;;  %p801_p1 = scmp.lt.s32.totalorder %s799_s9, %s795_s6 }
  0x24   : > { %697 = vmatpush.xpose.msk.msra.mxu1 %vm263_vm0, %v239_v7  ;;  %v203_v7 = vld [vmem:[%s1097_s2] sm:$0xff] }
  0x25   : > { %773 = vset.pattern.permute.xlu1 %v844_v49  ;;  %772 = vset.pattern.permute.xlu0 %v844_v49  ;;  %p797_p12 = pnand %p796_p11, %p910_p5  ;;  %p802_p2 = por %p801_p1, %p800_p0 }
  0x26   : > { %451 = vperm.xlu1 %773, %v991_v29   ;;  %447 = vperm.xlu0 %772, %v1005_v34  }
  0x27   : > { %678 = vmatpush.xpose.msk.msra.mxu0 %vm263_vm0, %v222_v8  ;;  %774 = vset.pattern.permute.xlu2 %v845_v2  ;;  %v846_v8 = vmov 3   ;;  %p798_p13 = pneg %p797_p12 }
  0x28   : > { %698 = vmatpush.xpose.msk.msra.mxu1 %vm263_vm0, %v238_v9  ;;  %534 = vperm.xlu2 %774, %v977_v24   ;;  %v204_v9 = vld [vmem:[%s1097_s2 + $0x8] sm:$0xff] }
  0x29   : > { %p803_p3 = pnand %p802_p2, %p798_p13 }
  0x2b   : > { %679 = vmatpush.xpose.msk.msra.mxu0 %vm263_vm0, %v221_v10  ;;  %v205_v10 = vld [vmem:[%s1097_s2 + $0x10] sm:$0xff] }
  0x2c   : > { %699 = vmatpush.xpose.msk.msra.mxu1 %vm263_vm0, %v237_v11  ;;  %v206_v11 = vld [vmem:[%s1097_s2 + $0x18] sm:$0xff] }
  0x2e   : > { %775 = vset.pattern.permute.xlu1 %v845_v2  ;;  %776 = vset.pattern.permute.xlu0 %v845_v2 }
  0x2f   : > { %680 = vmatpush.xpose.msk.msra.mxu0 %vm263_vm0, %v220_v12  ;;  %538 = vperm.xlu1 %775, %v963_v18  }
  0x30   : > { %700 = vmatpush.xpose.msk.msra.mxu1 %vm263_vm0, %v236_v13  ;;  %546 = vperm.xlu0 %776, %v991_v29  }
  0x31   : > { %542 = vperm.xlu2 %774, %v1005_v34  }
  0x33   : > { %681 = vmatpush.xpose.msk.msra.mxu0 %vm263_vm0, %v219_v14 }
  0x34   : > { %701 = vmatpush.xpose.msk.msra.mxu1 %vm263_vm0, %v235_v15 }
  0x37   : > { %682 = vmatpush.xpose.msk.msra.mxu0 %vm263_vm0, %v218_v16  ;;  %777 = vset.pattern.permute.xlu1 %v846_v8 }
  0x38   : > { %702 = vmatpush.xpose.msk.msra.mxu1 %vm263_vm0, %v234_v17  ;;  %576 = vperm.xlu1 %777, %v977_v24  }
  0x39   : > { %778 = vset.pattern.permute.xlu0 %v846_v8 }
  0x3b   : > { %683 = vmatpush.xpose.msk.msra.mxu0 %vm263_vm0, %v217_v19 }
  0x3c   : > { %703 = vmatpush.xpose.msk.msra.mxu1 %vm263_vm0, %v233_v20 }
  0x3f   : > { %684 = vmatpush.xpose.msk.msra.mxu0 %vm263_vm0, %v216_v22 }
  0x40   : > { %704 = vmatpush.xpose.msk.msra.mxu1 %vm263_vm0, %v232_v23 }
  0x43   : > { %685 = vmatpush.xpose.msk.msra.mxu0 %vm263_vm0, %v215_v25 }
  0x44   : > { %705 = vmatpush.xpose.msk.msra.mxu1 %vm263_vm0, %v231_v26 }
  0x47   : > { %686 = vmatpush.xpose.msk.msra.mxu0 %vm263_vm0, %v214_v27 }
  0x48   : > { %706 = vmatpush.xpose.msk.msra.mxu1 %vm263_vm0, %v230_v28 }
  0x4b   : > { %687 = vmatpush.xpose.msk.msra.mxu0 %vm263_vm0, %v213_v30 }
  0x4c   : > { %707 = vmatpush.xpose.msk.msra.mxu1 %vm263_vm0, %v229_v31 }
  0x4f   : > { %688 = vmatpush.xpose.msk.msra.mxu0 %vm263_vm0, %v212_v32 }
  0x50   : > { %708 = vmatpush.xpose.msk.msra.mxu1 %vm263_vm0, %v228_v33 }
  0x53   : > { %689 = vmatpush.xpose.msk.msra.mxu0 %vm263_vm0, %v211_v35 }
  0x54   : > { %709 = vmatpush.xpose.msk.msra.mxu1 %vm263_vm0, %v227_v36 }
  0x56   : > { %690 = vmatmul.msk.f32.vlgmr.msra.gmra.mxu0 %vm263_vm0, %v199_v37 }
  0x57   : > { %710 = vmatmul.msk.f32.vlgmr.msra.gmra.mxu1 %vm263_vm0, %v199_v37 }
  0x5e   : > { %691 = vmatmul.msk.f32.gmra.mxu0 %vm263_vm0, %v200_v38 }
  0x5f   : > { %711 = vmatmul.msk.f32.gmra.mxu1 %vm263_vm0, %v200_v38 }
  0x66   : > { %692 = vmatmul.msk.f32.gmra.mxu0 %vm263_vm0, %v201_v39 }
  0x67   : > { %712 = vmatmul.msk.f32.gmra.mxu1 %vm263_vm0, %v201_v39 }
  0x6e   : > { %693 = vmatmul.msk.f32.gmra.mxu0 %vm263_vm0, %v202_v40 }
  0x6f   : > { %713 = vmatmul.msk.f32.gmra.mxu1 %vm263_vm0, %v202_v40 }
  0x71   : > { %v440_v12 = vpop.permute.xlu2 %439 }
  0x79   : > { %v444_v15 = vpop.permute.xlu2 %443 }
  0x82   : > { %v535_v20 = vpop.permute.xlu2 %534 }
  0x87   : > { %v261_v45 = vpop.permute.xlu0 %260  ;;  %v251_v46 = vpop.permute.xlu1 %250 }
  0x8b   : > { %v543_v38 = vpop.permute.xlu2 %542 }
  0x8f   : > { %v256_v50 = vpop.permute.xlu0 %255  ;;  %v246_v57 = vpop.permute.xlu1 %245 }
  0x98   : > { %v452_v18 = vpop.permute.xlu1 %451  ;;  %v448_v19 = vpop.permute.xlu0 %447 }
  0xa1   : > { %v539_v33 = vpop.permute.xlu1 %538 }
  0xd3   : > { %v389_v41 = vpop.f32.mrf.mxu0 }
  0xd4   : > { %v418_v42 = vpop.f32.mrf.mxu1  ;;  %v390_v62 = vadd.f32 %v389_v41, %v246_v57 }
  0xd5   : > { %v419_v63 = vadd.f32 %v418_v42, %v246_v57 }
  0xd6   : > { %v430_v5 = vmax.f32 %v390_v62, 0.0 }
  0xd7   : > { %v431_v6 = vmax.f32 %v419_v63, 0.0 }
  0xdb   : > { %v392_v43 = vpop.f32.mrf.mxu0 }
  0xdc   : > { %v421_v44 = vpop.f32.mrf.mxu1  ;;  %v393_v58 = vadd.f32 %v392_v43, %v251_v46 }
  0xdd   : > { %v422_v59 = vadd.f32 %v421_v44, %v251_v46 }
  0xde   : > { %v432_v3 = vmax.f32 %v393_v58, 0.0 }
  0xdf   : > { %v433_v4 = vmax.f32 %v422_v59, 0.0 }
  0xe3   : > { %v395_v47 = vpop.f32.mrf.mxu0 }
  0xe4   : > { %v424_v48 = vpop.f32.mrf.mxu1  ;;  %v396_v53 = vadd.f32 %v395_v47, %v256_v50  ;;  %v547_v47 = vpop.permute.xlu0 %546 }
  0xe5   : > { %v425_v54 = vadd.f32 %v424_v48, %v256_v50 }
  0xe6   : > { %v434_v0 = vmax.f32 %v396_v53, 0.0 }
  0xe7   : > { %v435_v1 = vmax.f32 %v425_v54, 0.0 }
  0xeb   : > { %v398_v51 = vpop.f32.mrf.mxu0 }
  0xec   : > { %v427_v52 = vpop.f32.mrf.mxu1  ;;  %v399_v55 = vadd.f32 %v398_v51, %v261_v45 }
  0xed   : > { %v428_v56 = vadd.f32 %v427_v52, %v261_v45 }
  0xee   : > { %v436_v60 = vmax.f32 %v399_v55, 0.0 }
  0xef   : > { %v437_v61 = vmax.f32 %v428_v56, 0.0 }
  0xf0   : > { %479 = vmatpush.msra.mxu2 %v436_v60 }
  0xf1   : > { %508 = vmatpush.msra.mxu3 %v437_v61 }
  0xf2   : > { %480 = vmatpush.msra.mxu2 %v434_v0 }
  0xf3   : > { %509 = vmatpush.msra.mxu3 %v435_v1 }
  0xf4   : > { %481 = vmatpush.msra.mxu2 %v432_v3 }
  0xf5   : > { %510 = vmatpush.msra.mxu3 %v433_v4  ;;  %v577_v4 = vpop.permute.xlu1 %576 }
  0xf6   : > { %482 = vmatpush.msra.mxu2 %v430_v5 }
  0xf7   : > { %511 = vmatpush.msra.mxu3 %v431_v6  ;;  %714 = vmatmul.msk.f32.vlgmr.msra.gmra.mxu2 %vm454_vm1, %v203_v7 }
  0xf8   : > { %718 = vmatmul.msk.f32.vlgmr.msra.gmra.mxu3 %vm454_vm1, %v203_v7  ;;  %v587_v7 = vlaneseq }
  0xfa   : > { %vm589_vm3 = vcmp.lt.s32.totalorder %v587_v7, 256 }
  0xff   : > { %715 = vmatmul.msk.f32.gmra.mxu2 %vm454_vm1, %v204_v9 }
 0x100   : > { %719 = vmatmul.msk.f32.gmra.mxu3 %vm454_vm1, %v204_v9 }
 0x107   : > { %716 = vmatmul.msk.f32.gmra.mxu2 %vm454_vm1, %v205_v10 }
 0x108   : > { %720 = vmatmul.msk.f32.gmra.mxu3 %vm454_vm1, %v205_v10 }
 0x10f   : > { %717 = vmatmul.msk.f32.gmra.mxu2 %vm454_vm1, %v206_v11 }
 0x110   : > { %721 = vmatmul.msk.f32.gmra.mxu3 %vm454_vm1, %v206_v11 }
 0x17a   : > { %v484_v13 = vpop.f32.mrf.mxu2 }
 0x17b   : > { %v513_v14 = vpop.f32.mrf.mxu3  ;;  %v485_v23 = vadd.f32 %v484_v13, %v440_v12 }
 0x17c   : > { %v514_v24 = vadd.f32 %v513_v14, %v440_v12 }
 0x17d   : > { %v525_v31 = vmax.f32 %v485_v23, 0.0 }
 0x17e   : > { %v526_v32 = vmax.f32 %v514_v24, 0.0 }
 0x17f   : > { %v549_v39 = vmul.f32 %v535_v20, %v525_v31 }
 0x180   : > { %v550_v40 = vmul.f32 %v535_v20, %v526_v32 }
 0x182   : > { %v487_v16 = vpop.f32.mrf.mxu2 }
 0x183   : > { %v516_v17 = vpop.f32.mrf.mxu3  ;;  %v488_v21 = vadd.f32 %v487_v16, %v444_v15 }
 0x184   : > { %v517_v22 = vadd.f32 %v516_v17, %v444_v15 }
 0x185   : > { %v527_v29 = vmax.f32 %v488_v21, 0.0 }
 0x186   : > { %v528_v30 = vmax.f32 %v517_v22, 0.0 }
 0x187   : > { %v551_v36 = vmul.f32 %v539_v33, %v527_v29 }
 0x188   : > { %v552_v37 = vmul.f32 %v539_v33, %v528_v30 }
 0x189   : > { %v557_v48 = vadd.f32 %v551_v36, %v549_v39 }
 0x18a   : > { %v490_v25 = vpop.f32.mrf.mxu2  ;;  %v566_v49 = vadd.f32 %v552_v37, %v550_v40 }
 0x18b   : > { %v519_v26 = vpop.f32.mrf.mxu3  ;;  %v491_v27 = vadd.f32 %v490_v25, %v448_v19 }
 0x18c   : > { %v520_v28 = vadd.f32 %v519_v26, %v448_v19 }
 0x18d   : > { %v529_v34 = vmax.f32 %v491_v27, 0.0 }
 0x18e   : > { %v530_v35 = vmax.f32 %v520_v28, 0.0 }
 0x18f   : > { %v553_v43 = vmul.f32 %v543_v38, %v529_v34 }
 0x190   : > { %v554_v44 = vmul.f32 %v543_v38, %v530_v35 }
 0x191   : > { %v558_v52 = vadd.f32 %v557_v48, %v553_v43 }
 0x192   : > { %v493_v41 = vpop.f32.mrf.mxu2  ;;  %v567_v53 = vadd.f32 %v566_v49, %v554_v44 }
 0x193   : > { %v522_v42 = vpop.f32.mrf.mxu3  ;;  %v494_v45 = vadd.f32 %v493_v41, %v452_v18 }
 0x194   : > { %v523_v46 = vadd.f32 %v522_v42, %v452_v18 }
 0x195   : > { %v531_v50 = vmax.f32 %v494_v45, 0.0 }
 0x196   : > { %v532_v51 = vmax.f32 %v523_v46, 0.0 }
 0x197   : > { %v555_v54 = vmul.f32 %v547_v47, %v531_v50 }
 0x198   : > { %v556_v55 = vmul.f32 %v547_v47, %v532_v51 }
 0x199   : > { %v559_v56 = vadd.f32 %v558_v52, %v555_v54 }
 0x19a   : > { %v568_v57 = vadd.f32 %v567_v53, %v556_v55 }
 0x19b   : > { %v560_v58 = vrot.slane %v559_v56, 4 }
 0x19c   : > { %v569_v59 = vrot.slane %v568_v57, 4 }
 0x19d   : > { %v561_v60 = vadd.f32 %v560_v58, %v559_v56 }
 0x19e   : > { %v570_v61 = vadd.f32 %v569_v59, %v568_v57 }
 0x19f   : > { %v562_v62 = vrot.slane %v561_v60, 2 }
 0x1a0   : > { %v571_v63 = vrot.slane %v570_v61, 2 }
 0x1a1   : > { %v563_v0 = vadd.f32 %v562_v62, %v561_v60 }
 0x1a2   : > { %v572_v1 = vadd.f32 %v571_v63, %v570_v61 }
 0x1a3   : > { %v564_v2 = vrot.slane %v563_v0, 1 }
 0x1a4   : > { %v573_v3 = vrot.slane %v572_v1, 1 }
 0x1a5   : > { %v565_v5 = vadd.f32 %v564_v2, %v563_v0 }
 0x1a6   : > { %v574_v6 = vadd.f32 %v573_v3, %v572_v1 }
 0x1a7   : > { %v579_v9 = vadd.f32 %v577_v4, %v565_v5 }
 0x1a8   : > { %v580_v8 = vadd.f32 %v577_v4, %v574_v6 }
 0x1aa   : > { %v583_v10 = vrot.slane %v580_v8, 7 }
 0x1ac   : > { %v585_v11 = vsel %vm584_vm2, %v579_v9, %v583_v10 }
 0x1ad   : > { %591 = vst.msk [vmem:[%s191_s28] sm:$0x3] %vm589_vm3, %v585_v11 }
 0x1ae   : > { %806 = shalt.err (!%p803_p3)
}
 0x1af   : > { %726 = dma.vmem_to_hbm [thread:$0]  (%p910_p5), %s606_s29, 32, %s608_s30, %s593_s19  }
 0x1b0 PF: > { %p732_p4 = scmp.ge.s32.totalorder %s841_s18, 2  ;;  %s619_s12 = sand.u32 1, %s829_s15  }
 0x1b1   : > { %s620_s13 = scalar_lea.sflag [#allocation3], %s619_s12 }
 0x1b2   : > { %p729_p7 = pnand %p732_p4, %p914_p6 }
 0x1b4   : > { %p730_p8 = pneg %p729_p7 }
 0x1b6   : > { %824 = dma.done.wait (%p730_p8), %s620_s13, 32  }
 0x1b7   : > { %826 = vsyncadd (%p730_p8), %s620_s13, 4294967264  ;;  %p14_p9 = scmp.ge.s32.totalorder %s897_s21, 4   ;;  %s1102_s15 = smov %s833_s16 }
 0x1b8   : > { %s1103_s16 = smov %s837_s17  ;;  %s1104_s17 = smov %s908_s24 }
 0x1b9   : > { %s1105_s18 = smov %s897_s21  ;;  %16 = sbr.rel (!%p14_p9) target bundleno = 3 (0x3), region = 71 }
 0x1be   :  { %626 = vsyncpa [#allocation3], 1 }
 0x1bf   :  { %628 = vsyncpa [#allocation3 + $0x1], 1 }

</bundles_post_ra>
